<compile_context>
chip_gen: v6e
topology: v6e:2x2x1
jax: 0.10.0
libtpu: 0.0.40
codegen_flags: <defaults>
</compile_context>

<pallas_src>
import functools

import numpy as np
import jax
import jax.numpy as jnp
from jax.experimental import pallas as pl
from jax.experimental.pallas import tpu as pltpu

try:  # prefer scipy's optimized Hungarian when present
    from scipy.optimize import linear_sum_assignment as _scipy_lsa
except Exception:  # pragma: no cover
    _scipy_lsa = None


def _round_up(x, m):
    return (x + m - 1) // m * m


# --------------------------------------------------------------------------
# Pallas kernel: dice-score + matching-cost hot path
#   grid = (BN_pad//TM, HW_pad//TK), semantics ("parallel", "arbitrary")
# --------------------------------------------------------------------------
def _matcher_cost_kernel(pred_ref, tgt_ref, tgt_sq_ref, prob_ref, c_ref,
                         num_acc, sq_acc, *, alpha):
    # pred_ref   : (TM, TK)      bf16 raw mask logits (streamed)
    # tgt_ref    : (TK, M_pad)   bf16 resized target masks, PRE-TRANSPOSED (streamed)
    # tgt_sq_ref : (1, M_pad)    f32  precomputed sum(tgt^2, -1) (resident)
    # prob_ref   : (TM, M_pad)   f32  matching_prob ** beta (resident per row tile)
    # c_ref      : (TM, M_pad)   f32  matching cost (written on last K step)
    # num_acc    : (TM, M_pad)   f32  scratch accumulator for sigmoid(pred) @ tgt
    # sq_acc     : (TM, 1)       f32  scratch accumulator for sum(sigmoid(pred)^2)
    k = pl.program_id(1)

    @pl.when(k == 0)
    def _():
        num_acc[...] = jnp.zeros_like(num_acc)
        sq_acc[...] = jnp.zeros_like(sq_acc)

    # sigmoid via a single tanh EUP push (exp + reciprocal is ~2x EUP pressure).
    # Padded pixels hold -1e4 -> tanh saturates to -1 -> x == 0 exactly.
    x = 0.5 * (jnp.tanh(0.5 * pred_ref[...].astype(jnp.float32)) + 1.0)

    # Standard (M,K)@(K,N) contraction: RHS is already (K, N) -> no XLU transpose.
    num_acc[...] += jax.lax.dot_general(
        x.astype(jnp.bfloat16), tgt_ref[...],
        dimension_numbers=(((1,), (0,)), ((), ())),
        preferred_element_type=jnp.float32)
    sq_acc[...] += jnp.sum(x * x, axis=-1, keepdims=True)

    @pl.when(k == pl.num_programs(1) - 1)
    def _():
        numerator = 2.0 * num_acc[...]
        denom = sq_acc[...] + tgt_sq_ref[...]
        score = numerator * pl.reciprocal(denom + 0.0001, approx=True)
        # Guard pow(0, alpha) (exp(alpha*log(0)) path) on padded rows/columns.
        score = jnp.maximum(score, 1e-20)
        c_ref[...] = jnp.power(score, alpha) * prob_ref[...]


# --------------------------------------------------------------------------
# Tiling / VMEM heuristics
# --------------------------------------------------------------------------
def _choose_row_tile(bn):
    """Row tile: multiple of 8; prefer 256/128 (MXU M edge) when BN padding waste
    stays bounded, otherwise shrink to avoid dead rows and keep several grid steps."""
    if bn <= 128:
        return _round_up(max(bn, 8), 8)          # block == full (padded) dim
    for tm in (256, 128, 64, 32, 16, 8):
        if _round_up(bn, tm) - bn <= max(bn // 8, 8):
            return tm
    return 8


def _choose_k_tile(hw):
    return min(2048, _round_up(hw, 128))


def _vmem_limit_bytes():
    try:
        cap = int(getattr(pltpu.get_tpu_info(), "vmem_capacity_bytes",
                          128 * 1024 * 1024))
    except Exception:
        cap = 128 * 1024 * 1024
    return int(min(cap // 2, 64 * 1024 * 1024))


def _estimate_vmem_bytes(tm, tk, m_pad):
    # double-buffered bf16 pred + tgt tiles, f32 sigmoid temp + its bf16 copy,
    # double-buffered prob/out f32 tiles, f32 accumulators.
    return (2 * tm * tk * 2 + 2 * tk * m_pad * 2
            + tm * tk * 4 + tm * tk * 2
            + 2 * tm * m_pad * 4 * 2 + tm * m_pad * 4 + tm * 128 * 4)


def compute_matching_cost(pred_logits_flat, tgt_masks_flat, matching_prob,
                          alpha, beta):
    """C = dice_score(sigmoid(pred), tgt)**alpha * matching_prob**beta via Pallas."""
    BN, HW = pred_logits_flat.shape
    M = tgt_masks_flat.shape[0]

    M_pad = _round_up(max(M, 1), 128)            # lane-dense output / epilogue
    TM = _choose_row_tile(BN)
    TK = _choose_k_tile(HW)

    vmem_limit = _vmem_limit_bytes()
    budget = (vmem_limit * 2) // 3
    while TK > 512 and _estimate_vmem_bytes(TM, TK, M_pad) > budget:
        TK = max(512, _round_up(TK // 2, 128))

    BN_pad = _round_up(BN, TM)
    HW_pad = _round_up(HW, TK)

    # Pixel padding uses a large negative so sigmoid(pad) == 0 and padded pixels
    # contribute nothing to the matmul or the row sum-of-squares.
    pred_p = jnp.full((BN_pad, HW_pad), -1e4, dtype=jnp.bfloat16)
    pred_p = pred_p.at[:BN, :HW].set(pred_logits_flat.astype(jnp.bfloat16))

    tgt_bf = tgt_masks_flat.astype(jnp.bfloat16)
    # Pre-transposed targets: one-time XLA transpose -> MXU-native (K, N) layout.
    tgt_t = jnp.zeros((HW_pad, M_pad), dtype=jnp.bfloat16)
    tgt_t = tgt_t.at[:HW, :M].set(tgt_bf.T)

    # Hoisted out of the per-tile loop: sum(tgt^2) per target (f32) ...
    tgt_sq = jnp.zeros((1, M_pad), dtype=jnp.float32)
    tgt_sq = tgt_sq.at[0, :M].set(
        jnp.sum(jnp.square(tgt_bf.astype(jnp.float32)), axis=-1))
    # ... and matching_prob ** beta (tiny (BN, M) op).
    prob_b = jnp.zeros((BN_pad, M_pad), dtype=jnp.float32)
    prob_b = prob_b.at[:BN, :M].set(
        jnp.power(matching_prob.astype(jnp.float32), beta))

    kernel = functools.partial(_matcher_cost_kernel, alpha=alpha)
    c_pad = pl.pallas_call(
        kernel,
        out_shape=jax.ShapeDtypeStruct((BN_pad, M_pad), jnp.float32),
        grid=(BN_pad // TM, HW_pad // TK),
        in_specs=[
            pl.BlockSpec((TM, TK), lambda i, k: (i, k)),        # pred tile (streamed)
            pl.BlockSpec((TK, M_pad), lambda i, k: (k, 0)),     # targets^T (streamed)
            pl.BlockSpec((1, M_pad), lambda i, k: (0, 0)),      # sum(tgt^2) (resident)
            pl.BlockSpec((TM, M_pad), lambda i, k: (i, 0)),     # prob**beta tile
        ],
        out_specs=pl.BlockSpec((TM, M_pad), lambda i, k: (i, 0)),
        scratch_shapes=[
            pltpu.VMEM((TM, M_pad), jnp.float32),               # numerator accum
            pltpu.VMEM((TM, 1), jnp.float32),                   # row sum-of-squares
        ],
        compiler_params=pltpu.CompilerParams(
            dimension_semantics=("parallel", "arbitrary"),
            vmem_limit_bytes=vmem_limit,
        ),
    )(pred_p, tgt_t, tgt_sq, prob_b)

    return c_pad[:BN, :M]


# --------------------------------------------------------------------------
# Host-side exact linear assignment (maximize).
# scipy if available; otherwise numpy-vectorized O(n^3) Hungarian fallback.
# --------------------------------------------------------------------------
# TODO(synk): linear_sum_assignment is inherently sequential host-side code with no
# clean Pallas equivalent; kept on the host.
def _hungarian_square_min(cost):
    """cost: (n, n) float64 to minimize. Returns row assigned to each column."""
    n = cost.shape[0]
    u = np.zeros(n + 1)
    v = np.zeros(n + 1)
    p = np.zeros(n + 1, dtype=np.int64)
    way = np.zeros(n + 1, dtype=np.int64)
    cols = np.arange(1, n + 1)
    for i in range(1, n + 1):
        p[0] = i
        j0 = 0
        minv = np.full(n + 1, np.inf)
        used = np.zeros(n + 1, dtype=bool)
        while True:
            used[j0] = True
            i0 = p[j0]
            free = cols[~used[1:]]                      # unused columns (vectorized)
            cur = cost[i0 - 1, free - 1] - u[i0] - v[free]
            upd = cur < minv[free]
            minv[free] = np.where(upd, cur, minv[free])
            way[free] = np.where(upd, j0, way[free])
            j1 = int(free[np.argmin(minv[free])])
            delta = minv[j1]
            u[p[used]] += delta
            v[used] -= delta
            minv[~used] -= delta
            j0 = j1
            if p[j0] == 0:
                break
        while j0:
            j1 = way[j0]
            p[j0] = p[j1]
            j0 = j1
    return p[1:] - 1


def _linear_sum_assignment_max(cost):
    cost = np.asarray(cost, dtype=np.float64)
    n_r, n_c = cost.shape
    if n_r == 0 or n_c == 0:
        return np.zeros(0, np.int64), np.zeros(0, np.int64)
    if _scipy_lsa is not None:
        rows, cols = _scipy_lsa(cost, maximize=True)
        rows = np.asarray(rows, dtype=np.int64)
        cols = np.asarray(cols, dtype=np.int64)
    else:
        n = max(n_r, n_c)
        sq = np.zeros((n, n), dtype=np.float64)
        sq[:n_r, :n_c] = -cost                          # maximize == minimize negative
        row4col = _hungarian_square_min(sq)
        rows, cols = [], []
        for j in range(n_c):
            r = int(row4col[j])
            if r < n_r:
                rows.append(r)
                cols.append(j)
        rows = np.asarray(rows, dtype=np.int64)
        cols = np.asarray(cols, dtype=np.int64)
    order = np.argsort(rows)
    return rows[order], cols[order]


# --------------------------------------------------------------------------
# SparseInstMatcher (JAX / Pallas version)
# --------------------------------------------------------------------------
class SparseInstMatcher:
    def __init__(self, alpha=0.8, beta=0.2):
        self.alpha = float(alpha)
        self.beta = float(beta)

    def forward(self, outputs, targets, input_shape):
        pred_masks = outputs["pred_masks"]          # (B, N, H, W)
        pred_logits_raw = outputs["pred_logits"]    # (B, N, num_classes)
        B, N, H, W = pred_masks.shape

        tgt_ids = (np.concatenate([np.asarray(v["labels"], dtype=np.int64)
                                   for v in targets])
                   if targets else np.zeros((0,), dtype=np.int64))
        if tgt_ids.shape[0] == 0:
            empty = jnp.asarray([], dtype=jnp.float32)
            return [(empty, empty)] * B, None

        # TODO(synk): nested_masks_from_list pads ragged per-image masks to a common
        # size; here all target masks are assumed to already share input_shape.
        tgt_masks = jnp.concatenate(
            [jnp.asarray(t["masks"], dtype=jnp.float32) for t in targets], axis=0)
        M = tgt_masks.shape[0]

        # Bilinear, half-pixel centers (~ F.interpolate(..., align_corners=False)).
        tgt_masks = jax.image.resize(tgt_masks, (M, H, W), method="bilinear",
                                     antialias=False)

        pred_masks_flat = pred_masks.reshape(B * N, H * W)
        tgt_masks_flat = tgt_masks.reshape(M, H * W)

        # matching_prob = sigmoid(pred_logits).view(B*N, C)[:, tgt_ids]   (glue)
        pred_prob = jax.nn.sigmoid(
            pred_logits_raw.reshape(B * N, -1).astype(jnp.float32))
        matching_prob = jnp.take(pred_prob, jnp.asarray(tgt_ids), axis=1)

        # --- Pallas hot path: dice score + cost combination ---
        C = compute_matching_cost(pred_masks_flat, tgt_masks_flat, matching_prob,
                                  self.alpha, self.beta)

        C_host = np.asarray(jax.block_until_ready(C)).reshape(B, N, M)
        sizes = [len(np.asarray(v["labels"])) for v in targets]
        indices = []
        offset = 0
        for i, sz in enumerate(sizes):
            rows, cols = _linear_sum_assignment_max(C_host[i, :, offset:offset + sz])
            indices.append((rows, cols))
            offset += sz
        return indices, C

    __call__ = forward


# --------------------------------------------------------------------------
# Demo
# --------------------------------------------------------------------------
if __name__ == "__main__":
    key = jax.random.PRNGKey(0)
    B, N, H, W = 2, 8, 16, 16
    num_classes = 4
    input_shape = (32, 32)

    k1, k2, k3, k4 = jax.random.split(key, 4)
    pred_masks = jax.random.normal(k1, (B, N, H, W), dtype=jnp.float32)
    pred_logits = jax.random.normal(k2, (B, N, num_classes), dtype=jnp.float32)

    def make_masks(k, n_inst):
        m = (jax.random.uniform(k, (n_inst,) + input_shape) > 0.6).astype(jnp.float32)
        m = m.at[:, 8:12, 8:12].set(1.0)   # guarantee positive pixels
        return m

    targets = [
        {"labels": np.array([1, 3, 0], dtype=np.int64), "masks": make_masks(k3, 3)},
        {"labels": np.array([2, 1], dtype=np.int64), "masks": make_masks(k4, 2)},
    ]
    outputs = {"pred_masks": pred_masks, "pred_logits": pred_logits}

    matcher = SparseInstMatcher(alpha=0.8, beta=0.2)
    indices, C = matcher(outputs, targets, input_shape)
    C = jax.block_until_ready(C)

    # ---- pure-JAX f32 reference for a loose numerical sanity check ----
    M = 5
    tgt_ref = jnp.concatenate([t["masks"] for t in targets], axis=0)
    tgt_ref = jax.image.resize(tgt_ref, (M, H, W), method="bilinear",
                               antialias=False).reshape(M, H * W)
    inp = jax.nn.sigmoid(pred_masks.reshape(B * N, H * W))
    num = 2.0 * inp @ tgt_ref.T
    den = jnp.sum(inp * inp, -1, keepdims=True) + jnp.sum(tgt_ref * tgt_ref, -1)[None, :]
    score_ref = num / (den + 1e-4)
    tgt_ids = np.concatenate([t["labels"] for t in targets])
    prob_ref = jax.nn.sigmoid(pred_logits.reshape(B * N, -1))[:, tgt_ids]
    C_ref = np.asarray(score_ref ** 0.8 * prob_ref ** 0.2)

    assert C.shape == (B * N, M)
    assert np.allclose(np.asarray(C), C_ref, atol=0.05, rtol=0.05), \
        float(np.max(np.abs(np.asarray(C) - C_ref)))
    assert len(indices) == B
    for (rows, cols), t in zip(indices, targets):
        assert rows.shape[0] == cols.shape[0] == len(t["labels"])
        assert len(set(rows.tolist())) == rows.shape[0]

    print("KERNEL_OK")
</pallas_src>

<mosaic_0001>
module attributes {stable_mosaic.version = 11 : i64} {
  func.func @_matcher_cost_kernel(%arg0: i32, %arg1: i32, %arg2: memref<16x256xbf16, #tpu.memory_space<vmem>>, %arg3: memref<256x128xbf16, #tpu.memory_space<vmem>>, %arg4: memref<1x128xf32, #tpu.memory_space<vmem>>, %arg5: memref<16x128xf32, #tpu.memory_space<vmem>>, %arg6: memref<16x128xf32, #tpu.memory_space<vmem>>, %arg7: memref<16x128xf32, #tpu.memory_space<vmem>>, %arg8: memref<16x1xf32, #tpu.memory_space<vmem>>) attributes {dimension_semantics = [#tpu.dimension_semantics<parallel>, #tpu.dimension_semantics<arbitrary>], iteration_bounds = array<i64: 1, 1>, scalar_prefetch = 0 : i64, scratch_operands = 2 : i64, tpu.core_type = #tpu.core_type<tc>, window_params = [{transform_indices = @transform_0, window_bounds = array<i64: 16, 256>}, {transform_indices = @transform_1, window_bounds = array<i64: 256, 128>}, {pipeline_mode = #tpu.pipeline_mode<synchronous>, transform_indices = @transform_2, window_bounds = array<i64: 1, 128>}, {transform_indices = @transform_3, window_bounds = array<i64: 16, 128>}, {transform_indices = @transform_4, window_bounds = array<i64: 16, 128>}]} {
    %c0_i32 = arith.constant 0 : i32
    %0 = arith.cmpi eq, %arg1, %c0_i32 : i32
    %1 = arith.extui %0 : i1 to i32
    %c0_i32_0 = arith.constant 0 : i32
    %2 = arith.cmpi ne, %1, %c0_i32_0 : i32
    scf.if %2 {
      %cst_18 = arith.constant 0.000000e+00 : f32
      %27 = vector.broadcast %cst_18 : f32 to vector<16x128xf32>
      %c0_19 = arith.constant 0 : index
      %c0_20 = arith.constant 0 : index
      %28 = vector.load %arg7[%c0_19, %c0_20] : memref<16x128xf32, #tpu.memory_space<vmem>>, vector<16x128xf32>
      tpu.vector_store %arg7[%c0_19, %c0_20], %27 {strides = array<i32>} : memref<16x128xf32, #tpu.memory_space<vmem>>, vector<16x128xf32>,
      %cst_21 = arith.constant 0.000000e+00 : f32
      %29 = vector.broadcast %cst_21 : f32 to vector<16x1xf32>
      %c0_22 = arith.constant 0 : index
      %c0_23 = arith.constant 0 : index
      %30 = vector.load %arg8[%c0_22, %c0_23] : memref<16x1xf32, #tpu.memory_space<vmem>>, vector<16x1xf32>
      tpu.vector_store %arg8[%c0_22, %c0_23], %29 {strides = array<i32>} : memref<16x1xf32, #tpu.memory_space<vmem>>, vector<16x1xf32>,
    } else {
    }
    %c0 = arith.constant 0 : index
    %c0_1 = arith.constant 0 : index
    %3 = vector.load %arg2[%c0, %c0_1] : memref<16x256xbf16, #tpu.memory_space<vmem>>, vector<16x256xbf16>
    %4 = arith.extf %3 : vector<16x256xbf16> to vector<16x256xf32>
    %cst = arith.constant 5.000000e-01 : f32
    %5 = vector.broadcast %cst : f32 to vector<16x256xf32>
    %6 = arith.mulf %5, %4 : vector<16x256xf32>
    %7 = math.tanh %6 : vector<16x256xf32>
    %cst_2 = arith.constant 1.000000e+00 : f32
    %8 = vector.broadcast %cst_2 : f32 to vector<16x256xf32>
    %9 = arith.addf %7, %8 : vector<16x256xf32>
    %cst_3 = arith.constant 5.000000e-01 : f32
    %10 = vector.broadcast %cst_3 : f32 to vector<16x256xf32>
    %11 = arith.mulf %10, %9 : vector<16x256xf32>
    %c0_4 = arith.constant 0 : index
    %c0_5 = arith.constant 0 : index
    %12 = vector.load %arg7[%c0_4, %c0_5] : memref<16x128xf32, #tpu.memory_space<vmem>>, vector<16x128xf32>
    %13 = arith.truncf %11 : vector<16x256xf32> to vector<16x256xbf16>
    %c0_6 = arith.constant 0 : index
    %c0_7 = arith.constant 0 : index
    %14 = vector.load %arg3[%c0_6, %c0_7] : memref<256x128xbf16, #tpu.memory_space<vmem>>, vector<256x128xbf16>
    %cst_8 = arith.constant dense<0.000000e+00> : vector<16x128xf32>
    %15 = tpu.matmul %13, %14, %cst_8 {dimension_numbers = #tpu.dot_dimension_numbers<[1], [0], [0], [1], [0, 0, 1, 1], [], []>} : vector<16x256xbf16>, vector<256x128xbf16>, vector<16x128xf32> -> vector<16x128xf32>
    %16 = arith.addf %12, %15 : vector<16x128xf32>
    %c0_9 = arith.constant 0 : index
    %c0_10 = arith.constant 0 : index
    %17 = vector.load %arg7[%c0_9, %c0_10] : memref<16x128xf32, #tpu.memory_space<vmem>>, vector<16x128xf32>
    tpu.vector_store %arg7[%c0_9, %c0_10], %16 {strides = array<i32>} : memref<16x128xf32, #tpu.memory_space<vmem>>, vector<16x128xf32>,
    %c0_11 = arith.constant 0 : index
    %c0_12 = arith.constant 0 : index
    %18 = vector.load %arg8[%c0_11, %c0_12] : memref<16x1xf32, #tpu.memory_space<vmem>>, vector<16x1xf32>
    %19 = arith.mulf %11, %11 : vector<16x256xf32>
    %cst_13 = arith.constant dense<0.000000e+00> : vector<16xf32>
    %20 = vector.multi_reduction <add>, %19, %cst_13 [1] : vector<16x256xf32> to vector<16xf32>
    %21 = vector.shape_cast %20 : vector<16xf32> to vector<16x1xf32>
    %22 = arith.addf %18, %21 : vector<16x1xf32>
    %c0_14 = arith.constant 0 : index
    %c0_15 = arith.constant 0 : index
    %23 = vector.load %arg8[%c0_14, %c0_15] : memref<16x1xf32, #tpu.memory_space<vmem>>, vector<16x1xf32>
    tpu.vector_store %arg8[%c0_14, %c0_15], %22 {strides = array<i32>} : memref<16x1xf32, #tpu.memory_space<vmem>>, vector<16x1xf32>,
    %c0_i32_16 = arith.constant 0 : i32
    %24 = arith.cmpi eq, %arg1, %c0_i32_16 : i32
    %25 = arith.extui %24 : i1 to i32
    %c0_i32_17 = arith.constant 0 : i32
    %26 = arith.cmpi ne, %25, %c0_i32_17 : i32
    scf.if %26 {
      %c0_18 = arith.constant 0 : index
      %c0_19 = arith.constant 0 : index
      %27 = vector.load %arg7[%c0_18, %c0_19] : memref<16x128xf32, #tpu.memory_space<vmem>>, vector<16x128xf32>
      %cst_20 = arith.constant 2.000000e+00 : f32
      %28 = vector.broadcast %cst_20 : f32 to vector<16x128xf32>
      %29 = arith.mulf %28, %27 : vector<16x128xf32>
      %c0_21 = arith.constant 0 : index
      %c0_22 = arith.constant 0 : index
      %30 = vector.load %arg8[%c0_21, %c0_22] : memref<16x1xf32, #tpu.memory_space<vmem>>, vector<16x1xf32>
      %c0_23 = arith.constant 0 : index
      %c0_24 = arith.constant 0 : index
      %31 = vector.load %arg4[%c0_23, %c0_24] : memref<1x128xf32, #tpu.memory_space<vmem>>, vector<1x128xf32>
      %32 = vector.broadcast %30 : vector<16x1xf32> to vector<16x128xf32>
      %33 = vector.broadcast %31 : vector<1x128xf32> to vector<16x128xf32>
      %34 = arith.addf %32, %33 : vector<16x128xf32>
      %cst_25 = arith.constant 9.99999974E-5 : f32
      %35 = vector.broadcast %cst_25 : f32 to vector<16x128xf32>
      %36 = arith.addf %34, %35 : vector<16x128xf32>
      %37 = tpu.reciprocal %36 {approx = true} : vector<16x128xf32> -> vector<16x128xf32>
      %38 = arith.mulf %29, %37 : vector<16x128xf32>
      %cst_26 = arith.constant 9.99999968E-21 : f32
      %39 = vector.broadcast %cst_26 : f32 to vector<16x128xf32>
      %40 = arith.maximumf %38, %39 : vector<16x128xf32>
      %cst_27 = arith.constant 8.000000e-01 : f32
      %41 = vector.broadcast %cst_27 : f32 to vector<16x128xf32>
      %42 = math.powf %40, %41 : vector<16x128xf32>
      %c0_28 = arith.constant 0 : index
      %c0_29 = arith.constant 0 : index
      %43 = vector.load %arg5[%c0_28, %c0_29] : memref<16x128xf32, #tpu.memory_space<vmem>>, vector<16x128xf32>
      %44 = arith.mulf %42, %43 : vector<16x128xf32>
      %c0_30 = arith.constant 0 : index
      %c0_31 = arith.constant 0 : index
      %45 = vector.load %arg6[%c0_30, %c0_31] : memref<16x128xf32, #tpu.memory_space<vmem>>, vector<16x128xf32>
      tpu.vector_store %arg6[%c0_30, %c0_31], %44 {strides = array<i32>} : memref<16x128xf32, #tpu.memory_space<vmem>>, vector<16x128xf32>,
    } else {
    }
    return
  }
  func.func @transform_0(%arg0: i32, %arg1: i32) -> (i32, i32) {
    %c0_i32 = arith.constant 0 : i32
    return %arg0, %arg1 : i32, i32
  }
  func.func @transform_1(%arg0: i32, %arg1: i32) -> (i32, i32) {
    %c0_i32 = arith.constant 0 : i32
    %c0_i32_0 = arith.constant 0 : i32
    return %arg1, %c0_i32 : i32, i32
  }
  func.func @transform_2(%arg0: i32, %arg1: i32) -> (i32, i32) {
    %c0_i32 = arith.constant 0 : i32
    %c0_i32_0 = arith.constant 0 : i32
    %c0_i32_1 = arith.constant 0 : i32
    return %c0_i32, %c0_i32_0 : i32, i32
  }
  func.func @transform_3(%arg0: i32, %arg1: i32) -> (i32, i32) {
    %c0_i32 = arith.constant 0 : i32
    %c0_i32_0 = arith.constant 0 : i32
    return %arg0, %c0_i32 : i32, i32
  }
  func.func @transform_4(%arg0: i32, %arg1: i32) -> (i32, i32) {
    %c0_i32 = arith.constant 0 : i32
    %c0_i32_0 = arith.constant 0 : i32
    return %arg0, %c0_i32 : i32, i32
  }
}

</mosaic_0001>

<bundles_post_ra>
// kernel: tpu_custom_call.1
= control target key start
LH: loop header
LB: loop body
LE: loop exit
PB: predicated region body
PF: predicated region fallthrough
CT: control target
= control target key end

     0   :  { %9 = vsyncpa [#allocation5], 0  ;;  %s635_s0 = inlined_call_operand.hbm [shape: bf16[16,256], index: 0, kind: input, shape index: {}]   ;;  %s636_s1 = inlined_call_operand.hbm [shape: bf16[256,128], index: 1, kind: input, shape index: {}]   ;;  %s637_s2 = inlined_call_operand.vmem [shape: f32[1,128], index: 2, kind: input, shape index: {}]   ;;  %s638_s3 = inlined_call_operand.hbm [shape: f32[16,128], index: 3, kind: input, shape index: {}]   ;;  %s639_s4 = inlined_call_operand.hbm [shape: f32[16,128], index: 4, kind: output, shape index: {}]  }
   0x1   :  { %10 = vsyncpa [#allocation8], 0 }
   0x2   :  { %11 = vsyncpa [#allocation6], 0  ;;  %s572_s15 = smov [#allocation7]  }
   0x3   :  { %s29_s16 = sshll.u32 %s572_s15, 4  ;;  %s30_s16 = int_to_ptr.vmem [resolvable:$true] %s29_s16 }
   0x4   :  { %s494_s17 = scalar_lea.vmem %s30_s16, 2048  ;;  %p499_p1 = scmp.lt.s32.totalorder %s30_s16, %s30_s16 }
   0x5   :  { %p495_p0 = scmp.ne.s32.totalorder %s30_s16, %s494_s17  ;;  %p500_p2 = scmp.lt.s32.totalorder %s494_s17, %s494_s17 }
   0x7   :  { %p501_p3 = por %p500_p2, %p499_p1 }
   0x9   :  { %p502_p4 = pnand %p501_p3, %p495_p0 }
   0xb   :  { %505 = shalt.err (!%p502_p4)
}
   0xc   :  { %s573_s18 = smov 64   ;;  %s574_s19 = smov 4  }
   0xd   :  { %35 = dma.hbm_to_vmem [thread:$0]  %s636_s1, 2048, %s30_s16, [#allocation8], %s573_s18, %s573_s18, %s574_s19  }
   0xe   :  { %s575_s22 = smov [#allocation4]  }
   0xf   :  { %s17_s23 = sshll.u32 %s575_s22, 4  ;;  %s18_s23 = int_to_ptr.vmem [resolvable:$true] %s17_s23 }
  0x10   :  { %s514_s24 = scalar_lea.vmem %s18_s23, 256  ;;  %p519_p6 = scmp.lt.s32.totalorder %s18_s23, %s18_s23 }
  0x11   :  { %p515_p5 = scmp.ne.s32.totalorder %s18_s23, %s514_s24  ;;  %p520_p7 = scmp.lt.s32.totalorder %s514_s24, %s514_s24 }
  0x13   :  { %p521_p8 = por %p520_p7, %p519_p6 }
  0x15   :  { %p522_p9 = pnand %p521_p8, %p515_p5 }
  0x17   :  { %525 = shalt.err (!%p522_p9)
}
  0x18   :  { %s576_s25 = smov 128   ;;  %s577_s26 = smov 8  }
  0x19   :  { %23 = dma.hbm_to_vmem [thread:$0]  %s635_s0, 256, %s18_s23, [#allocation5], %s576_s25, %s576_s25, %s577_s26  }
  0x1a   :  { %s578_s1 = smov [#allocation9]  }
  0x1b   :  { %s43_s29 = sshll.u32 %s578_s1, 4  ;;  %s44_s29 = int_to_ptr.vmem [resolvable:$true] %s43_s29 }
  0x1c   :  { %s534_s30 = scalar_lea.vmem %s44_s29, 256  ;;  %p539_p11 = scmp.lt.s32.totalorder %s44_s29, %s44_s29 }
  0x1d   :  { %p535_p10 = scmp.ne.s32.totalorder %s44_s29, %s534_s30  ;;  %p540_p12 = scmp.lt.s32.totalorder %s534_s30, %s534_s30 }
  0x1f   :  { %p541_p13 = por %p540_p12, %p539_p11 }
  0x21   :  { %p542_p0 = pnand %p541_p13, %p535_p10 }
  0x23   :  { %545 = shalt.err (!%p542_p0)
}
  0x24   :  { %49 = dma.hbm_to_vmem [thread:$0]  %s638_s3, 256, %s44_s29, [#allocation8], %s576_s25, %s576_s25, %s577_s26  }
  0x25   :  { %566 = dma.done.wait [#allocation5], 256  }
  0x26   :  { %567 = vsyncadd [#allocation5], 4294967040 }
  0x27   :  { %568 = dma.done.wait [#allocation8], 2304  }
  0x28   :  { %569 = vsyncadd [#allocation8], 4294964992  ;;  %vm66_vm0 = vcmask 7168   ;;  %v579_v0 = vmov 0.0   ;;  %v69_v1 = vld [vmem:[#allocation4] sm:$0xff]  ;;  %v70_v2 = vld [vmem:[#allocation4 + $0x8] sm:$0xff] }
  0x29   :  { %67 = vst.msk [vmem:[#allocation3] sm:$0xff] %vm66_vm0, %v579_v0  ;;  %68 = vst.msk [vmem:[#allocation3 + $0x8] sm:$0xff] %vm66_vm0, %v579_v0  ;;  %v71_v3 = vunpack.c.l.bf16 %v69_v1  ;;  %v72_v4 = vunpack.c.h.bf16 %v69_v1  ;;  %v73_v5 = vunpack.c.l.bf16 %v70_v2  ;;  %v74_v6 = vunpack.c.h.bf16 %v70_v2  ;;  %v450_v7 = vld [vmem:[#allocation7 + $0x78] sm:$0xff]   ;;  %v452_v13 = vld [vmem:[#allocation7 + $0x70] sm:$0xff]  }
  0x2a   :  { %v451_v8 = vld [vmem:[#allocation7 + $0x38] sm:$0xff]   ;;  %364 = vmatprep.subr.bf16.mxu0 %v450_v7  ;;  %v453_v14 = vld [vmem:[#allocation7 + $0x30] sm:$0xff]   ;;  %v454_v15 = vld [vmem:[#allocation7 + $0x68] sm:$0xff]   ;;  %v580_v47 = vmov 0  }
  0x2b   :  { %v75_v9 = vmul.f32 0.5, %v71_v3  ;;  %v76_v10 = vmul.f32 0.5, %v72_v4  ;;  %v77_v11 = vmul.f32 0.5, %v73_v5  ;;  %v78_v12 = vmul.f32 0.5, %v74_v6  ;;  %365 = vmatpush3.bf16.msra.mxu0 %v451_v8  ;;  %v455_v16 = vld [vmem:[#allocation7 + $0x28] sm:$0xff]   ;;  %v456_v17 = vld [vmem:[#allocation7 + $0x60] sm:$0xff]   ;;  %448 = vset.pattern.permute.xlu1 %v580_v47 }
  0x2c   :  { %366 = vmatprep.subr.bf16.mxu0 %v452_v13  ;;  %v457_v18 = vld [vmem:[#allocation7 + $0x20] sm:$0xff]   ;;  %v458_v19 = vld [vmem:[#allocation7 + $0x58] sm:$0xff]   ;;  %v460_v21 = vld [vmem:[#allocation7 + $0x50] sm:$0xff]   ;;  %449 = vset.pattern.permute.xlu0 %v580_v47 }
  0x2d   :  { %466 = vtanh.f32 %v75_v9  ;;  %v459_v20 = vld [vmem:[#allocation7 + $0x18] sm:$0xff]   ;;  %v461_v27 = vld [vmem:[#allocation7 + $0x10] sm:$0xff]   ;;  %v462_v31 = vld [vmem:[#allocation7 + $0x48] sm:$0xff]  }
  0x2e   :  { %468 = vtanh.f32 %v76_v10  ;;  %v463_v38 = vld [vmem:[#allocation7 + $0x8] sm:$0xff]   ;;  %v464_v40 = vld [vmem:[#allocation7 + $0x40] sm:$0xff]  }
  0x2f   :  { %470 = vtanh.f32 %v77_v11  ;;  %367 = vmatpush3.bf16.msra.mxu0 %v453_v14  ;;  %v465_v45 = vld [vmem:[#allocation7] sm:$0xff]  }
  0x30   :  { %472 = vtanh.f32 %v78_v12  ;;  %368 = vmatprep.subr.bf16.mxu0 %v454_v15  ;;  %v268_v48 = vld [vmem:[#allocation3] sm:$0xff]  ;;  %v269_v51 = vld [vmem:[#allocation3 + $0x8] sm:$0xff] }
  0x31   :  { %v363_v56 = vld [vmem:[%s637_s2] ss:$0 sm:$0xff]  ;;  %s581_s2 = smov [#allocation10]  }
  0x32   :  { %s334_s7 = sshll.u32 %s581_s2, 4  ;;  %s335_s7 = int_to_ptr.vmem [resolvable:$true] %s334_s7 }
  0x33   :  { %369 = vmatpush3.bf16.msra.mxu0 %v455_v16  ;;  %s546_s8 = scalar_lea.vmem %s335_s7, 256  ;;  %p551_p2 = scmp.lt.s32.totalorder %s335_s7, %s335_s7 }
  0x34   :  { %370 = vmatprep.subr.bf16.mxu0 %v456_v17  ;;  %p547_p1 = scmp.ne.s32.totalorder %s335_s7, %s546_s8  ;;  %p552_p3 = scmp.lt.s32.totalorder %s546_s8, %s546_s8 }
  0x36   :  { %p553_p4 = por %p552_p3, %p551_p2 }
  0x37   :  { %371 = vmatpush3.bf16.msra.mxu0 %v457_v18 }
  0x38   :  { %372 = vmatprep.subr.bf16.mxu0 %v458_v19  ;;  %p554_p5 = pnand %p553_p4, %p547_p1 }
  0x3a   :  { %v467_v22 = vpop.eup %466 }
  0x3b   :  { %v469_v23 = vpop.eup %468  ;;  %v83_v24 = vadd.f32 1.0, %v467_v22  ;;  %373 = vmatpush3.bf16.msra.mxu0 %v459_v20 }
  0x3c   :  { %v471_v25 = vpop.eup %470  ;;  %v84_v26 = vadd.f32 1.0, %v469_v23  ;;  %374 = vmatprep.subr.bf16.mxu0 %v460_v21  ;;  %v323_v23 = vld [vmem:[#allocation9] sm:$0xff] }
  0x3d   :  { %v473_v28 = vpop.eup %472  ;;  %v87_v29 = vmul.f32 0.5, %v83_v24  ;;  %v85_v30 = vadd.f32 1.0, %v471_v25 }
  0x3e   :  { %v88_v32 = vmul.f32 0.5, %v84_v26  ;;  %v86_v33 = vadd.f32 1.0, %v473_v28 }
  0x3f   :  { %v270_v34 = vmul.f32 %v87_v29, %v87_v29  ;;  %v89_v35 = vmul.f32 0.5, %v85_v30  ;;  %375 = vmatpush3.bf16.msra.mxu0 %v461_v27 }
  0x40   :  { %v271_v36 = vmul.f32 %v88_v32, %v88_v32  ;;  %v90_v37 = vmul.f32 0.5, %v86_v33  ;;  %376 = vmatprep.subr.bf16.mxu0 %v462_v31  ;;  %v324_v31 = vld [vmem:[#allocation9 + $0x8] sm:$0xff] }
  0x41   :  { %v272_v39 = vmul.f32 %v89_v35, %v89_v35  ;;  %v93_v46 = vpack.c.bf16 %v89_v35, %v87_v29 }
  0x42   :  { %v274_v41 = vadd.f32 %v271_v36, %v270_v34  ;;  %v273_v42 = vmul.f32 %v90_v37, %v90_v37  ;;  %v94_v43 = vpack.c.bf16 %v90_v37, %v88_v32 }
  0x43   :  { %377 = vmatpush3.bf16.msra.mxu0 %v463_v38 }
  0x44   :  { %275 = vadd.xlane.f32.xlu0 %v274_v41  ;;  %v277_v44 = vadd.f32 %v273_v42, %v272_v39  ;;  %378 = vmatprep.subr.bf16.mxu0 %v464_v40 }
  0x45   :  { %255 = vmatprep.mubr.bf16.mxu0 %v94_v43 }
  0x47   :  { %379 = vmatpush3.bf16.msra.mxu0 %v465_v45 }
  0x48   :  { %278 = vadd.xlane.f32.xlu0 %v277_v44 }
  0x4a   :  { %256 = vmatmul.mubr.bf16.vlgmr.msra.gmra.mxu0 %v93_v46 }
  0xcd   :  { %v276_v49 = vpop.xlane.xlu0 %275 }
  0xce   :  { %v280_v50 = vadd.f32 %v276_v49, %v268_v48 }
  0xd0   :  { %283 = vst.msk [vmem:[#allocation3] sm:$0xff] %vm66_vm0, %v280_v50 }
  0xd1   :  { %v279_v52 = vpop.xlane.xlu0 %278 }
  0xd2   :  { %v281_v53 = vadd.f32 %v279_v52, %v269_v51 }
  0xd4   :  { %284 = vst.msk [vmem:[#allocation3 + $0x8] sm:$0xff] %vm66_vm0, %v281_v53 }
  0xd7   :  { %v292_v54 = vld [vmem:[#allocation3] sm:$0xff] }
  0xd8   :  { %297 = vperm.xlu1 %448, %v292_v54  }
  0xdb   :  { %v293_v55 = vld [vmem:[#allocation3 + $0x8] sm:$0xff] }
  0xdc   :  { %302 = vperm.xlu1 %448, %v293_v55  }
 0x10a   :  { %v380_v59 = vpop.f32.mrf.mxu0 }
 0x10c   :  { %v381_v63 = vpop.f32.mrf.mxu0 }
 0x10d   :  { %v382_v2 = vadd.f32 %v381_v63, %v380_v59 }
 0x10e   :  { %v383_v1 = vpop.f32.mrf.mxu0 }
 0x10f   :  { %v290_v4 = vmul.f32 2.0, %v382_v2 }
 0x110   :  { %v384_v3 = vpop.f32.mrf.mxu0 }
 0x111   :  { %v385_v5 = vadd.f32 %v384_v3, %v383_v1 }
 0x113   :  { %v291_v9 = vmul.f32 2.0, %v385_v5 }
 0x153   :  { %v298_v57 = vpop.permute.xlu1 %297 }
 0x154   :  { %v311_v58 = vadd.f32 %v363_v56, %v298_v57 }
 0x156   :  { %v313_v60 = vadd.f32 0.0001, %v311_v58 }
 0x157   :  { %v303_v61 = vpop.permute.xlu1 %302 }
 0x158   :  { %474 = vrcp.f32 %v313_v60  ;;  %v312_v62 = vadd.f32 %v363_v56, %v303_v61 }
 0x15a   :  { %v314_v0 = vadd.f32 0.0001, %v312_v62 }
 0x15c   :  { %476 = vrcp.f32 %v314_v0 }
 0x165   :  { %v475_v6 = vpop.eup %474 }
 0x166   :  { %v317_v7 = vmul.f32 %v475_v6, %v290_v4 }
 0x168   :  { %v319_v8 = vmax.f32 %v317_v7, 1e-20 }
 0x169   :  { %v477_v10 = vpop.eup %476 }
 0x16a   :  { %v318_v11 = vmul.f32 %v477_v10, %v291_v9  ;;  %v390_v12 = vand.u32 2147483647, %v319_v8  ;;  %vm394_vm1 = vcmp.lt.f32.partialorder %v319_v8, 0  ;;  %vm395_vm2 = vcmp.eq.f32.partialorder %v319_v8, 0 }
 0x16b   :  { %vm407_vm4 = vcmp.ne.f32.partialorder %v319_v8, %v319_v8  ;;  %vm396_vm5 = vcmp.eq.f32.partialorder %v319_v8, 1065353216 }
 0x16c   :  { %v320_v13 = vmax.f32 %v318_v11, 1e-20  ;;  %478 = vlog2.f32 %v390_v12  ;;  %vm399_vm3 = vcmp.eq.f32.partialorder %v390_v12, 2139095040 }
 0x16e   :  { %v416_v14 = vand.u32 2147483647, %v320_v13  ;;  %vm420_vm6 = vcmp.lt.f32.partialorder %v320_v13, 0  ;;  %vm421_vm7 = vcmp.eq.f32.partialorder %v320_v13, 0  ;;  %vm433_vm9 = vcmp.ne.f32.partialorder %v320_v13, %v320_v13 }
 0x16f   :  { %vm422_vm10 = vcmp.eq.f32.partialorder %v320_v13, 1065353216 }
 0x170   :  { %480 = vlog2.f32 %v416_v14  ;;  %vm425_vm8 = vcmp.eq.f32.partialorder %v416_v14, 2139095040 }
 0x179   :  { %v479_v15 = vpop.eup %478 }
 0x17a   :  { %v392_v16 = vmul.f32 0.8, %v479_v15 }
 0x17c   :  { %482 = vpow2.f32 %v392_v16 }
 0x17d   :  { %v481_v17 = vpop.eup %480 }
 0x17e   :  { %v418_v18 = vmul.f32 0.8, %v481_v17 }
 0x180   :  { %484 = vpow2.f32 %v418_v18 }
 0x189   :  { %v483_v19 = vpop.eup %482 }
 0x18a   :  { %v400_v20 = vsel %vm394_vm1, 2143289344, %v483_v19 }
 0x18b   :  { %v401_v21 = vsel %vm395_vm2, 0, %v400_v20 }
 0x18c   :  { %v406_v22 = vsel %vm399_vm3, 2139095040, %v401_v21 }
 0x18d   :  { %v485_v24 = vpop.eup %484  ;;  %v410_v25 = vsel %vm407_vm4, 2143289344, %v406_v22 }
 0x18e   :  { %v411_v26 = vsel %vm396_vm5, 1065353216, %v410_v25  ;;  %v426_v27 = vsel %vm420_vm6, 2143289344, %v485_v24 }
 0x18f   :  { %v427_v28 = vsel %vm421_vm7, 0, %v426_v27  ;;  %v325_v29 = vmul.f32 %v411_v26, %v323_v23 }
 0x190   :  { %v432_v30 = vsel %vm425_vm8, 2139095040, %v427_v28 }
 0x191   :  { %v436_v32 = vsel %vm433_vm9, 2143289344, %v432_v30  ;;  %327 = vst [vmem:[#allocation10] sm:$0xff] %v325_v29 }
 0x192   :  { %v437_v33 = vsel %vm422_vm10, 1065353216, %v436_v32 }
 0x193   :  { %v326_v34 = vmul.f32 %v437_v33, %v324_v31 }
 0x195   :  { %328 = vst [vmem:[#allocation10 + $0x8] sm:$0xff] %v326_v34 }
 0x196   :  { %557 = shalt.err (!%p554_p5)
}
 0x197   :  { %340 = dma.vmem_to_hbm [thread:$0]  %s335_s7, 256, %s639_s4, [#allocation6], %s576_s25, %s576_s25, %s577_s26  }
 0x198   :  { %570 = dma.done.wait [#allocation6], 256  }
 0x199   :  { %571 = vsyncadd [#allocation6], 4294967040 }
 0x19a   :  { %344 = vsyncpa [#allocation5], 1 }
 0x19b   :  { %345 = vsyncpa [#allocation8], 1 }
 0x19c   :  { %346 = vsyncpa [#allocation6], 1 }

</bundles_post_ra>
